<compile_context>
chip_gen: v5e
topology: v5e:2x2
jax: 0.10.0
libtpu: 0.0.40
codegen_flags: <defaults>
</compile_context>

<pallas_src>
import functools
import math

import jax
import jax.numpy as jnp
from jax.experimental import pallas as pl
from jax.experimental.pallas import tpu as pltpu


# ----------------------------------------------------------------------------
# Kernel
# ----------------------------------------------------------------------------
def _layer_norm(x, gamma, beta, eps=1e-5):
    mu = jnp.mean(x, axis=-1, keepdims=True)
    var = jnp.mean((x - mu) ** 2, axis=-1, keepdims=True)
    return (x - mu) * jax.lax.rsqrt(var + eps) * gamma + beta


def encoder_stack_kernel(num_heads,
                         x_ref, mask_ref,
                         wqkv_ref, bqkv_ref, wo_ref,
                         w1_ref, b1_ref, w2_ref, vec_ref,
                         out_ref):
    """Grid step (b, l): apply encoder layer `l` to batch element `b`.

    out_ref's block index is constant over the layer axis, so it is the
    VMEM-resident activation buffer across all layers of this batch element.
    """
    layer = pl.program_id(1)

    # Seed the resident activation buffer with the embedded inputs at layer 0.
    @pl.when(layer == 0)
    def _():
        out_ref[...] = x_ref[...]

    _, S, H = out_ref.shape
    nh = num_heads
    dh = H // nh

    x2 = out_ref[0]                        # (S, H) f32 current activations
    mask = mask_ref[0]                     # (1, S) additive key-padding bias

    wqkv = wqkv_ref[0]                     # (H, 3H) bf16, q-part pre-scaled
    bqkv = bqkv_ref[0]                     # (1, 3H) f32, bq pre-scaled
    wo = wo_ref[0]                         # (H, H) bf16
    w1 = w1_ref[0]                         # (H, F) bf16
    b1 = b1_ref[0]                         # (1, F) f32
    w2 = w2_ref[0]                         # (F, H) bf16
    vec = vec_ref[0]                       # (6, H) f32, packed small vectors
    bo, g1, be1 = vec[0:1], vec[1:2], vec[2:3]
    b2, g2, be2 = vec[3:4], vec[4:5], vec[5:6]

    # --- fused Q/K/V projection: one lane-dense (S,H) @ (H,3H) matmul
    qkv = jnp.dot(x2.astype(jnp.bfloat16), wqkv,
                  preferred_element_type=jnp.float32) + bqkv    # (S, 3H) f32
    q = qkv[:, :H].astype(jnp.bfloat16)                         # (S, H) head-major cols
    k = qkv[:, H:2 * H].astype(jnp.bfloat16)
    v = qkv[:, 2 * H:].astype(jnp.bfloat16)

    # --- attention core: per-head 2-D matmuls (scale already folded into q)
    ctx_heads = []
    for h in range(nh):
        sl = slice(h * dh, (h + 1) * dh)
        s = jnp.einsum('qd,kd->qk', q[:, sl], k[:, sl],
                       preferred_element_type=jnp.float32)      # (S, S) f32
        s = s + mask                                            # mask padded keys
        s = s - jnp.max(s, axis=-1, keepdims=True)              # stable softmax (f32)
        p = jnp.exp(s)
        p = p * pl.reciprocal(jnp.sum(p, axis=-1, keepdims=True), approx=True)
        ctx_heads.append(jnp.dot(p.astype(jnp.bfloat16), v[:, sl],
                                 preferred_element_type=jnp.float32))   # (S, dh)
    ctx = jnp.concatenate(ctx_heads, axis=-1)                   # (S, H) = concat heads

    # --- head merge fused into one full-width output projection
    attn = jnp.dot(ctx.astype(jnp.bfloat16), wo,
                   preferred_element_type=jnp.float32) + bo     # (S, H)

    # --- residual + LayerNorm 1 (f32)
    feat = _layer_norm(attn + x2, g1, be1)

    # --- FeedForward (Linear -> ReLU -> Linear)
    hid = jnp.dot(feat.astype(jnp.bfloat16), w1,
                  preferred_element_type=jnp.float32) + b1
    hid = jnp.maximum(hid, 0.0)
    ff = jnp.dot(hid.astype(jnp.bfloat16), w2,
                 preferred_element_type=jnp.float32) + b2

    # --- residual + LayerNorm 2; write back to the resident output block
    out_ref[0] = _layer_norm(ff + feat, g2, be2)


# ----------------------------------------------------------------------------
# Wrappers
# ----------------------------------------------------------------------------
def _vmem_limit_bytes():
    """Per-generation VMEM budget (~85% of physical, capped at 110 MiB)."""
    try:
        cap = pltpu.get_tpu_info().vmem_capacity_bytes
    except Exception:
        return None
    return min(int(cap * 0.85), 110 * 1024 * 1024)


def encoder_stack_pallas(x, mask_bias, p, num_heads):
    B, S, H = x.shape
    L = p["wqkv"].shape[0]
    F = p["w1"].shape[-1]

    kernel = functools.partial(encoder_stack_kernel, num_heads)

    def per_layer(shape):
        zeros = (0,) * len(shape)
        return pl.BlockSpec((1,) + shape, lambda b, l: (l,) + zeros)

    grid_spec = pltpu.PrefetchScalarGridSpec(
        num_scalar_prefetch=0,
        grid=(B, L),                                           # batch outer, layers inner
        in_specs=[
            pl.BlockSpec((1, S, H), lambda b, l: (b, 0, 0)),   # layer-0 activations
            pl.BlockSpec((1, 1, S), lambda b, l: (b, 0, 0)),   # additive key-pad mask
            per_layer((H, 3 * H)),                             # packed Wqkv (bf16)
            per_layer((1, 3 * H)),                             # packed q/k/v bias
            per_layer((H, H)),                                 # Wo (bf16)
            per_layer((H, F)),                                 # FFN W1 (bf16)
            per_layer((1, F)),                                 # FFN b1
            per_layer((F, H)),                                 # FFN W2 (bf16)
            per_layer((6, H)),                                 # bo,g1,be1,b2,g2,be2
        ],
        out_specs=pl.BlockSpec((1, S, H), lambda b, l: (b, 0, 0)),  # resident acts
    )

    cp_kwargs = dict(dimension_semantics=("parallel", "arbitrary"))
    limit = _vmem_limit_bytes()
    if limit is not None:
        cp_kwargs["vmem_limit_bytes"] = limit

    return pl.pallas_call(
        kernel,
        out_shape=jax.ShapeDtypeStruct((B, S, H), jnp.float32),
        grid_spec=grid_spec,
        compiler_params=pltpu.CompilerParams(**cp_kwargs),
    )(x, mask_bias, p["wqkv"], p["bqkv"], p["wo"],
      p["w1"], p["b1"], p["w2"], p["vec"])


def sinusoidal_pe(max_len, hidden):
    pos = jnp.arange(max_len, dtype=jnp.float32)[:, None]
    div = jnp.exp(jnp.arange(0, hidden, 2, dtype=jnp.float32)
                  * (-math.log(10000.0) / hidden))
    pe = jnp.zeros((max_len, hidden), jnp.float32)
    pe = pe.at[:, 0::2].set(jnp.sin(pos * div))
    pe = pe.at[:, 1::2].set(jnp.cos(pos * div))
    return pe


def init_encoder_params(key, vocab_size, num_layers, hidden, num_heads, feedward):
    """Random params, pre-packed for the fused Pallas kernel.

    Wq and bq are pre-scaled by 1/sqrt(dh); Wq/Wk/Wv are packed into a single
    (H, 3H) matrix so the kernel runs one lane-dense QKV matmul per layer.
    """
    dh = hidden // num_heads
    scale = 1.0 / math.sqrt(dh)
    keys = jax.random.split(key, 1 + num_layers)
    emb = 0.02 * jax.random.normal(keys[0], (vocab_size, hidden), jnp.float32)
    emb = emb.at[0].set(0.0)                      # padding_idx = 0

    wqkv_l, bqkv_l, wo_l, w1_l, b1_l, w2_l, vec_l = [], [], [], [], [], [], []
    s = 0.05
    for li in range(num_layers):
        ks = jax.random.split(keys[1 + li], 10)
        wq = s * jax.random.normal(ks[0], (hidden, hidden), jnp.float32)
        wk = s * jax.random.normal(ks[1], (hidden, hidden), jnp.float32)
        wv = s * jax.random.normal(ks[2], (hidden, hidden), jnp.float32)
        wo = s * jax.random.normal(ks[3], (hidden, hidden), jnp.float32)
        w1 = s * jax.random.normal(ks[4], (hidden, feedward), jnp.float32)
        w2 = s * jax.random.normal(ks[5], (feedward, hidden), jnp.float32)
        bq = 0.02 * jax.random.normal(ks[6], (hidden,), jnp.float32)
        bk = 0.02 * jax.random.normal(ks[7], (hidden,), jnp.float32)
        bv = 0.02 * jax.random.normal(ks[8], (hidden,), jnp.float32)
        b1 = 0.02 * jax.random.normal(ks[9], (feedward,), jnp.float32)
        bo = jnp.zeros((hidden,), jnp.float32)
        b2 = jnp.zeros((hidden,), jnp.float32)
        g1 = jnp.ones((hidden,), jnp.float32)
        be1 = jnp.zeros((hidden,), jnp.float32)
        g2 = jnp.ones((hidden,), jnp.float32)
        be2 = jnp.zeros((hidden,), jnp.float32)

        # Fold the attention scale into Wq/bq; pack Q/K/V along the lane axis.
        wqkv_l.append(jnp.concatenate([wq * scale, wk, wv], axis=1))   # (H, 3H)
        bqkv_l.append(jnp.concatenate([bq * scale, bk, bv])[None, :])  # (1, 3H)
        wo_l.append(wo)                                                # (H, H)
        w1_l.append(w1)
        b1_l.append(b1[None, :])                                       # (1, F)
        w2_l.append(w2)
        vec_l.append(jnp.stack([bo, g1, be1, b2, g2, be2], axis=0))    # (6, H)

    params = dict(
        wqkv=jnp.stack(wqkv_l).astype(jnp.bfloat16),   # (L, H, 3H)
        bqkv=jnp.stack(bqkv_l),                        # (L, 1, 3H) f32
        wo=jnp.stack(wo_l).astype(jnp.bfloat16),       # (L, H, H)
        w1=jnp.stack(w1_l).astype(jnp.bfloat16),       # (L, H, F)
        b1=jnp.stack(b1_l),                            # (L, 1, F) f32
        w2=jnp.stack(w2_l).astype(jnp.bfloat16),       # (L, F, H)
        vec=jnp.stack(vec_l),                          # (L, 6, H) f32
    )
    return emb, params


def encoder_forward(tokens, pad_mask, emb_table, pe, params, num_heads):
    """Encoder.forward: Embedding -> PositionalEncoding -> N x EncoderLayer."""
    B, S = tokens.shape
    x = emb_table[tokens]                           # embedding gather (glue)
    x = x + pe[:S][None, :, :]                      # positional encoding add
    # key_padding_mask: True => padded key, excluded from attention (-1e9 bias)
    mask_bias = jnp.where(pad_mask, -1e9, 0.0).astype(jnp.float32)[:, None, :]
    # TODO(synk): dropout omitted (eval mode / identity)
    return encoder_stack_pallas(x, mask_bias, params, num_heads)


# ----------------------------------------------------------------------------
if __name__ == "__main__":
    # small config consistent with Encoder(vocab, layers, hidden, heads, feedward)
    VOCAB, NUM_LAYERS, HIDDEN, NUM_HEADS, FEEDWARD = 50, 2, 32, 4, 64
    B, S = 2, 8

    key = jax.random.PRNGKey(0)
    k_tok, k_par = jax.random.split(key)

    tokens = jax.random.randint(k_tok, (B, S), 1, VOCAB)
    tokens = tokens.at[:, -2:].set(0)               # trailing padding tokens
    pad_mask = tokens == 0                          # True on padding

    emb_table, params = init_encoder_params(k_par, VOCAB, NUM_LAYERS,
                                            HIDDEN, NUM_HEADS, FEEDWARD)
    pe = sinusoidal_pe(512, HIDDEN)

    out = encoder_forward(tokens, pad_mask, emb_table, pe, params, NUM_HEADS)
    out = jax.block_until_ready(out)
    assert out.shape == (B, S, HIDDEN)
    assert bool(jnp.all(jnp.isfinite(out)))
    print("KERNEL_OK")
</pallas_src>

<mosaic_0001>
module attributes {stable_mosaic.version = 11 : i64} {
  func.func @encoder_stack_kernel(%arg0: i32, %arg1: i32, %arg2: memref<1x8x32xf32, #tpu.memory_space<vmem>>, %arg3: memref<1x1x8xf32, #tpu.memory_space<vmem>>, %arg4: memref<1x32x96xbf16, #tpu.memory_space<vmem>>, %arg5: memref<1x1x96xf32, #tpu.memory_space<vmem>>, %arg6: memref<1x32x32xbf16, #tpu.memory_space<vmem>>, %arg7: memref<1x32x64xbf16, #tpu.memory_space<vmem>>, %arg8: memref<1x1x64xf32, #tpu.memory_space<vmem>>, %arg9: memref<1x64x32xbf16, #tpu.memory_space<vmem>>, %arg10: memref<1x6x32xf32, #tpu.memory_space<vmem>>, %arg11: memref<1x8x32xf32, #tpu.memory_space<vmem>>) attributes {dimension_semantics = [#tpu.dimension_semantics<parallel>, #tpu.dimension_semantics<arbitrary>], iteration_bounds = array<i64: 2, 2>, scalar_prefetch = 0 : i64, scratch_operands = 0 : i64, tpu.core_type = #tpu.core_type<tc>, window_params = [{transform_indices = @transform_0, window_bounds = array<i64: 1, 8, 32>}, {transform_indices = @transform_1, window_bounds = array<i64: 1, 1, 8>}, {transform_indices = @transform_2, window_bounds = array<i64: 1, 32, 96>}, {transform_indices = @transform_3, window_bounds = array<i64: 1, 1, 96>}, {transform_indices = @transform_4, window_bounds = array<i64: 1, 32, 32>}, {transform_indices = @transform_5, window_bounds = array<i64: 1, 32, 64>}, {transform_indices = @transform_6, window_bounds = array<i64: 1, 1, 64>}, {transform_indices = @transform_7, window_bounds = array<i64: 1, 64, 32>}, {transform_indices = @transform_8, window_bounds = array<i64: 1, 6, 32>}, {transform_indices = @transform_9, window_bounds = array<i64: 1, 8, 32>}]} {
    %c0_i32 = arith.constant 0 : i32
    %0 = arith.cmpi eq, %arg1, %c0_i32 : i32
    %1 = arith.extui %0 : i1 to i32
    %c0_i32_0 = arith.constant 0 : i32
    %2 = arith.cmpi ne, %1, %c0_i32_0 : i32
    scf.if %2 {
      %c0_60 = arith.constant 0 : index
      %c0_61 = arith.constant 0 : index
      %c0_62 = arith.constant 0 : index
      %173 = vector.load %arg2[%c0_60, %c0_61, %c0_62] : memref<1x8x32xf32, #tpu.memory_space<vmem>>, vector<1x8x32xf32>
      %c0_63 = arith.constant 0 : index
      %c0_64 = arith.constant 0 : index
      %c0_65 = arith.constant 0 : index
      %174 = vector.load %arg11[%c0_63, %c0_64, %c0_65] : memref<1x8x32xf32, #tpu.memory_space<vmem>>, vector<1x8x32xf32>
      tpu.vector_store %arg11[%c0_63, %c0_64, %c0_65], %173 {strides = array<i32>} : memref<1x8x32xf32, #tpu.memory_space<vmem>>, vector<1x8x32xf32>,
    } else {
    }
    %c0 = arith.constant 0 : index
    %c0_1 = arith.constant 0 : index
    %c0_2 = arith.constant 0 : index
    %3 = vector.load %arg11[%c0, %c0_1, %c0_2] : memref<1x8x32xf32, #tpu.memory_space<vmem>>, vector<1x8x32xf32>
    %4 = vector.shape_cast %3 : vector<1x8x32xf32> to vector<8x32xf32>
    %c0_3 = arith.constant 0 : index
    %c0_4 = arith.constant 0 : index
    %c0_5 = arith.constant 0 : index
    %5 = vector.load %arg3[%c0_3, %c0_4, %c0_5] : memref<1x1x8xf32, #tpu.memory_space<vmem>>, vector<1x1x8xf32>
    %6 = vector.shape_cast %5 : vector<1x1x8xf32> to vector<1x8xf32>
    %c0_6 = arith.constant 0 : index
    %c0_7 = arith.constant 0 : index
    %c0_8 = arith.constant 0 : index
    %7 = vector.load %arg4[%c0_6, %c0_7, %c0_8] : memref<1x32x96xbf16, #tpu.memory_space<vmem>>, vector<1x32x96xbf16>
    %8 = vector.shape_cast %7 : vector<1x32x96xbf16> to vector<32x96xbf16>
    %c0_9 = arith.constant 0 : index
    %c0_10 = arith.constant 0 : index
    %c0_11 = arith.constant 0 : index
    %9 = vector.load %arg5[%c0_9, %c0_10, %c0_11] : memref<1x1x96xf32, #tpu.memory_space<vmem>>, vector<1x1x96xf32>
    %10 = vector.shape_cast %9 : vector<1x1x96xf32> to vector<1x96xf32>
    %c0_12 = arith.constant 0 : index
    %c0_13 = arith.constant 0 : index
    %c0_14 = arith.constant 0 : index
    %11 = vector.load %arg6[%c0_12, %c0_13, %c0_14] : memref<1x32x32xbf16, #tpu.memory_space<vmem>>, vector<1x32x32xbf16>
    %12 = vector.shape_cast %11 : vector<1x32x32xbf16> to vector<32x32xbf16>
    %c0_15 = arith.constant 0 : index
    %c0_16 = arith.constant 0 : index
    %c0_17 = arith.constant 0 : index
    %13 = vector.load %arg7[%c0_15, %c0_16, %c0_17] : memref<1x32x64xbf16, #tpu.memory_space<vmem>>, vector<1x32x64xbf16>
    %14 = vector.shape_cast %13 : vector<1x32x64xbf16> to vector<32x64xbf16>
    %c0_18 = arith.constant 0 : index
    %c0_19 = arith.constant 0 : index
    %c0_20 = arith.constant 0 : index
    %15 = vector.load %arg8[%c0_18, %c0_19, %c0_20] : memref<1x1x64xf32, #tpu.memory_space<vmem>>, vector<1x1x64xf32>
    %16 = vector.shape_cast %15 : vector<1x1x64xf32> to vector<1x64xf32>
    %c0_21 = arith.constant 0 : index
    %c0_22 = arith.constant 0 : index
    %c0_23 = arith.constant 0 : index
    %17 = vector.load %arg9[%c0_21, %c0_22, %c0_23] : memref<1x64x32xbf16, #tpu.memory_space<vmem>>, vector<1x64x32xbf16>
    %18 = vector.shape_cast %17 : vector<1x64x32xbf16> to vector<64x32xbf16>
    %c0_24 = arith.constant 0 : index
    %c0_25 = arith.constant 0 : index
    %c0_26 = arith.constant 0 : index
    %19 = vector.load %arg10[%c0_24, %c0_25, %c0_26] : memref<1x6x32xf32, #tpu.memory_space<vmem>>, vector<1x6x32xf32>
    %20 = vector.shape_cast %19 : vector<1x6x32xf32> to vector<6x32xf32>
    %21 = vector.extract_strided_slice %20 {offsets = [0, 0], sizes = [1, 32], strides = [1, 1]} : vector<6x32xf32> to vector<1x32xf32>
    %22 = vector.extract_strided_slice %20 {offsets = [1, 0], sizes = [1, 32], strides = [1, 1]} : vector<6x32xf32> to vector<1x32xf32>
    %23 = vector.extract_strided_slice %20 {offsets = [2, 0], sizes = [1, 32], strides = [1, 1]} : vector<6x32xf32> to vector<1x32xf32>
    %24 = vector.extract_strided_slice %20 {offsets = [3, 0], sizes = [1, 32], strides = [1, 1]} : vector<6x32xf32> to vector<1x32xf32>
    %25 = vector.extract_strided_slice %20 {offsets = [4, 0], sizes = [1, 32], strides = [1, 1]} : vector<6x32xf32> to vector<1x32xf32>
    %26 = vector.extract_strided_slice %20 {offsets = [5, 0], sizes = [1, 32], strides = [1, 1]} : vector<6x32xf32> to vector<1x32xf32>
    %27 = arith.truncf %4 : vector<8x32xf32> to vector<8x32xbf16>
    %cst = arith.constant dense<0.000000e+00> : vector<8x96xf32>
    %28 = tpu.matmul %27, %8, %cst {dimension_numbers = #tpu.dot_dimension_numbers<[1], [0], [0], [1], [0, 0, 1, 1], [], []>} : vector<8x32xbf16>, vector<32x96xbf16>, vector<8x96xf32> -> vector<8x96xf32>
    %29 = vector.broadcast %10 : vector<1x96xf32> to vector<8x96xf32>
    %30 = arith.addf %28, %29 : vector<8x96xf32>
    %31 = vector.extract_strided_slice %30 {offsets = [0, 0], sizes = [8, 32], strides = [1, 1]} : vector<8x96xf32> to vector<8x32xf32>
    %32 = arith.truncf %31 : vector<8x32xf32> to vector<8x32xbf16>
    %33 = vector.extract_strided_slice %30 {offsets = [0, 32], sizes = [8, 32], strides = [1, 1]} : vector<8x96xf32> to vector<8x32xf32>
    %34 = arith.truncf %33 : vector<8x32xf32> to vector<8x32xbf16>
    %35 = vector.extract_strided_slice %30 {offsets = [0, 64], sizes = [8, 32], strides = [1, 1]} : vector<8x96xf32> to vector<8x32xf32>
    %36 = arith.truncf %35 : vector<8x32xf32> to vector<8x32xbf16>
    %37 = vector.extract_strided_slice %32 {offsets = [0, 0], sizes = [8, 8], strides = [1, 1]} : vector<8x32xbf16> to vector<8x8xbf16>
    %38 = vector.extract_strided_slice %34 {offsets = [0, 0], sizes = [8, 8], strides = [1, 1]} : vector<8x32xbf16> to vector<8x8xbf16>
    "tpu.trace_start"() <{level = 10 : i32, message = "qd,kd->qk"}> : () -> ()
    %cst_27 = arith.constant dense<0.000000e+00> : vector<8x8xf32>
    %39 = tpu.matmul %37, %38, %cst_27 {dimension_numbers = #tpu.dot_dimension_numbers<[1], [1], [0], [0], [0, 0, 1, 0], [], []>} : vector<8x8xbf16>, vector<8x8xbf16>, vector<8x8xf32> -> vector<8x8xf32>
    "tpu.trace_stop"() : () -> ()
    %40 = vector.broadcast %6 : vector<1x8xf32> to vector<8x8xf32>
    %41 = arith.addf %39, %40 : vector<8x8xf32>
    %cst_28 = arith.constant dense<0xFF800000> : vector<8xf32>
    %42 = vector.multi_reduction <maximumf>, %41, %cst_28 [1] : vector<8x8xf32> to vector<8xf32>
    %43 = vector.shape_cast %42 : vector<8xf32> to vector<8x1xf32>
    %44 = vector.broadcast %43 : vector<8x1xf32> to vector<8x8xf32>
    %45 = arith.subf %41, %44 : vector<8x8xf32>
    %46 = math.exp %45 : vector<8x8xf32>
    %cst_29 = arith.constant dense<0.000000e+00> : vector<8xf32>
    %47 = vector.multi_reduction <add>, %46, %cst_29 [1] : vector<8x8xf32> to vector<8xf32>
    %48 = vector.shape_cast %47 : vector<8xf32> to vector<8x1xf32>
    %49 = tpu.reciprocal %48 {approx = true} : vector<8x1xf32> -> vector<8x1xf32>
    %50 = vector.broadcast %49 : vector<8x1xf32> to vector<8x8xf32>
    %51 = arith.mulf %46, %50 : vector<8x8xf32>
    %52 = arith.truncf %51 : vector<8x8xf32> to vector<8x8xbf16>
    %53 = vector.extract_strided_slice %36 {offsets = [0, 0], sizes = [8, 8], strides = [1, 1]} : vector<8x32xbf16> to vector<8x8xbf16>
    %cst_30 = arith.constant dense<0.000000e+00> : vector<8x8xf32>
    %54 = tpu.matmul %52, %53, %cst_30 {dimension_numbers = #tpu.dot_dimension_numbers<[1], [0], [0], [1], [0, 0, 1, 1], [], []>} : vector<8x8xbf16>, vector<8x8xbf16>, vector<8x8xf32> -> vector<8x8xf32>
    %55 = vector.extract_strided_slice %32 {offsets = [0, 8], sizes = [8, 8], strides = [1, 1]} : vector<8x32xbf16> to vector<8x8xbf16>
    %56 = vector.extract_strided_slice %34 {offsets = [0, 8], sizes = [8, 8], strides = [1, 1]} : vector<8x32xbf16> to vector<8x8xbf16>
    "tpu.trace_start"() <{level = 10 : i32, message = "qd,kd->qk"}> : () -> ()
    %cst_31 = arith.constant dense<0.000000e+00> : vector<8x8xf32>
    %57 = tpu.matmul %55, %56, %cst_31 {dimension_numbers = #tpu.dot_dimension_numbers<[1], [1], [0], [0], [0, 0, 1, 0], [], []>} : vector<8x8xbf16>, vector<8x8xbf16>, vector<8x8xf32> -> vector<8x8xf32>
    "tpu.trace_stop"() : () -> ()
    %58 = vector.broadcast %6 : vector<1x8xf32> to vector<8x8xf32>
    %59 = arith.addf %57, %58 : vector<8x8xf32>
    %cst_32 = arith.constant dense<0xFF800000> : vector<8xf32>
    %60 = vector.multi_reduction <maximumf>, %59, %cst_32 [1] : vector<8x8xf32> to vector<8xf32>
    %61 = vector.shape_cast %60 : vector<8xf32> to vector<8x1xf32>
    %62 = vector.broadcast %61 : vector<8x1xf32> to vector<8x8xf32>
    %63 = arith.subf %59, %62 : vector<8x8xf32>
    %64 = math.exp %63 : vector<8x8xf32>
    %cst_33 = arith.constant dense<0.000000e+00> : vector<8xf32>
    %65 = vector.multi_reduction <add>, %64, %cst_33 [1] : vector<8x8xf32> to vector<8xf32>
    %66 = vector.shape_cast %65 : vector<8xf32> to vector<8x1xf32>
    %67 = tpu.reciprocal %66 {approx = true} : vector<8x1xf32> -> vector<8x1xf32>
    %68 = vector.broadcast %67 : vector<8x1xf32> to vector<8x8xf32>
    %69 = arith.mulf %64, %68 : vector<8x8xf32>
    %70 = arith.truncf %69 : vector<8x8xf32> to vector<8x8xbf16>
    %71 = vector.extract_strided_slice %36 {offsets = [0, 8], sizes = [8, 8], strides = [1, 1]} : vector<8x32xbf16> to vector<8x8xbf16>
    %cst_34 = arith.constant dense<0.000000e+00> : vector<8x8xf32>
    %72 = tpu.matmul %70, %71, %cst_34 {dimension_numbers = #tpu.dot_dimension_numbers<[1], [0], [0], [1], [0, 0, 1, 1], [], []>} : vector<8x8xbf16>, vector<8x8xbf16>, vector<8x8xf32> -> vector<8x8xf32>
    %73 = vector.extract_strided_slice %32 {offsets = [0, 16], sizes = [8, 8], strides = [1, 1]} : vector<8x32xbf16> to vector<8x8xbf16>
    %74 = vector.extract_strided_slice %34 {offsets = [0, 16], sizes = [8, 8], strides = [1, 1]} : vector<8x32xbf16> to vector<8x8xbf16>
    "tpu.trace_start"() <{level = 10 : i32, message = "qd,kd->qk"}> : () -> ()
    %cst_35 = arith.constant dense<0.000000e+00> : vector<8x8xf32>
    %75 = tpu.matmul %73, %74, %cst_35 {dimension_numbers = #tpu.dot_dimension_numbers<[1], [1], [0], [0], [0, 0, 1, 0], [], []>} : vector<8x8xbf16>, vector<8x8xbf16>, vector<8x8xf32> -> vector<8x8xf32>
    "tpu.trace_stop"() : () -> ()
    %76 = vector.broadcast %6 : vector<1x8xf32> to vector<8x8xf32>
    %77 = arith.addf %75, %76 : vector<8x8xf32>
    %cst_36 = arith.constant dense<0xFF800000> : vector<8xf32>
    %78 = vector.multi_reduction <maximumf>, %77, %cst_36 [1] : vector<8x8xf32> to vector<8xf32>
    %79 = vector.shape_cast %78 : vector<8xf32> to vector<8x1xf32>
    %80 = vector.broadcast %79 : vector<8x1xf32> to vector<8x8xf32>
    %81 = arith.subf %77, %80 : vector<8x8xf32>
    %82 = math.exp %81 : vector<8x8xf32>
    %cst_37 = arith.constant dense<0.000000e+00> : vector<8xf32>
    %83 = vector.multi_reduction <add>, %82, %cst_37 [1] : vector<8x8xf32> to vector<8xf32>
    %84 = vector.shape_cast %83 : vector<8xf32> to vector<8x1xf32>
    %85 = tpu.reciprocal %84 {approx = true} : vector<8x1xf32> -> vector<8x1xf32>
    %86 = vector.broadcast %85 : vector<8x1xf32> to vector<8x8xf32>
    %87 = arith.mulf %82, %86 : vector<8x8xf32>
    %88 = arith.truncf %87 : vector<8x8xf32> to vector<8x8xbf16>
    %89 = vector.extract_strided_slice %36 {offsets = [0, 16], sizes = [8, 8], strides = [1, 1]} : vector<8x32xbf16> to vector<8x8xbf16>
    %cst_38 = arith.constant dense<0.000000e+00> : vector<8x8xf32>
    %90 = tpu.matmul %88, %89, %cst_38 {dimension_numbers = #tpu.dot_dimension_numbers<[1], [0], [0], [1], [0, 0, 1, 1], [], []>} : vector<8x8xbf16>, vector<8x8xbf16>, vector<8x8xf32> -> vector<8x8xf32>
    %91 = vector.extract_strided_slice %32 {offsets = [0, 24], sizes = [8, 8], strides = [1, 1]} : vector<8x32xbf16> to vector<8x8xbf16>
    %92 = vector.extract_strided_slice %34 {offsets = [0, 24], sizes = [8, 8], strides = [1, 1]} : vector<8x32xbf16> to vector<8x8xbf16>
    "tpu.trace_start"() <{level = 10 : i32, message = "qd,kd->qk"}> : () -> ()
    %cst_39 = arith.constant dense<0.000000e+00> : vector<8x8xf32>
    %93 = tpu.matmul %91, %92, %cst_39 {dimension_numbers = #tpu.dot_dimension_numbers<[1], [1], [0], [0], [0, 0, 1, 0], [], []>} : vector<8x8xbf16>, vector<8x8xbf16>, vector<8x8xf32> -> vector<8x8xf32>
    "tpu.trace_stop"() : () -> ()
    %94 = vector.broadcast %6 : vector<1x8xf32> to vector<8x8xf32>
    %95 = arith.addf %93, %94 : vector<8x8xf32>
    %cst_40 = arith.constant dense<0xFF800000> : vector<8xf32>
    %96 = vector.multi_reduction <maximumf>, %95, %cst_40 [1] : vector<8x8xf32> to vector<8xf32>
    %97 = vector.shape_cast %96 : vector<8xf32> to vector<8x1xf32>
    %98 = vector.broadcast %97 : vector<8x1xf32> to vector<8x8xf32>
    %99 = arith.subf %95, %98 : vector<8x8xf32>
    %100 = math.exp %99 : vector<8x8xf32>
    %cst_41 = arith.constant dense<0.000000e+00> : vector<8xf32>
    %101 = vector.multi_reduction <add>, %100, %cst_41 [1] : vector<8x8xf32> to vector<8xf32>
    %102 = vector.shape_cast %101 : vector<8xf32> to vector<8x1xf32>
    %103 = tpu.reciprocal %102 {approx = true} : vector<8x1xf32> -> vector<8x1xf32>
    %104 = vector.broadcast %103 : vector<8x1xf32> to vector<8x8xf32>
    %105 = arith.mulf %100, %104 : vector<8x8xf32>
    %106 = arith.truncf %105 : vector<8x8xf32> to vector<8x8xbf16>
    %107 = vector.extract_strided_slice %36 {offsets = [0, 24], sizes = [8, 8], strides = [1, 1]} : vector<8x32xbf16> to vector<8x8xbf16>
    %cst_42 = arith.constant dense<0.000000e+00> : vector<8x8xf32>
    %108 = tpu.matmul %106, %107, %cst_42 {dimension_numbers = #tpu.dot_dimension_numbers<[1], [0], [0], [1], [0, 0, 1, 1], [], []>} : vector<8x8xbf16>, vector<8x8xbf16>, vector<8x8xf32> -> vector<8x8xf32>
    %109 = tpu.concatenate %54, %72, %90, %108 in 1 : vector<8x8xf32>, vector<8x8xf32>, vector<8x8xf32>, vector<8x8xf32> -> vector<8x32xf32>
    %110 = arith.truncf %109 : vector<8x32xf32> to vector<8x32xbf16>
    %cst_43 = arith.constant dense<0.000000e+00> : vector<8x32xf32>
    %111 = tpu.matmul %110, %12, %cst_43 {dimension_numbers = #tpu.dot_dimension_numbers<[1], [0], [0], [1], [0, 0, 1, 1], [], []>} : vector<8x32xbf16>, vector<32x32xbf16>, vector<8x32xf32> -> vector<8x32xf32>
    %112 = vector.broadcast %21 : vector<1x32xf32> to vector<8x32xf32>
    %113 = arith.addf %111, %112 : vector<8x32xf32>
    %114 = arith.addf %113, %4 : vector<8x32xf32>
    %cst_44 = arith.constant dense<0.000000e+00> : vector<8xf32>
    %115 = vector.multi_reduction <add>, %114, %cst_44 [1] : vector<8x32xf32> to vector<8xf32>
    %116 = vector.shape_cast %115 : vector<8xf32> to vector<8x1xf32>
    %cst_45 = arith.constant 3.200000e+01 : f32
    %117 = vector.broadcast %cst_45 : f32 to vector<8x1xf32>
    %118 = arith.divf %116, %117 : vector<8x1xf32>
    %119 = vector.broadcast %118 : vector<8x1xf32> to vector<8x32xf32>
    %120 = arith.subf %114, %119 : vector<8x32xf32>
    %121 = arith.mulf %120, %120 : vector<8x32xf32>
    %cst_46 = arith.constant dense<0.000000e+00> : vector<8xf32>
    %122 = vector.multi_reduction <add>, %121, %cst_46 [1] : vector<8x32xf32> to vector<8xf32>
    %123 = vector.shape_cast %122 : vector<8xf32> to vector<8x1xf32>
    %cst_47 = arith.constant 3.200000e+01 : f32
    %124 = vector.broadcast %cst_47 : f32 to vector<8x1xf32>
    %125 = arith.divf %123, %124 : vector<8x1xf32>
    %126 = vector.broadcast %118 : vector<8x1xf32> to vector<8x32xf32>
    %127 = arith.subf %114, %126 : vector<8x32xf32>
    %cst_48 = arith.constant 9.99999974E-6 : f32
    %128 = vector.broadcast %cst_48 : f32 to vector<8x1xf32>
    %129 = arith.addf %125, %128 : vector<8x1xf32>
    %130 = math.rsqrt %129 : vector<8x1xf32>
    %131 = vector.broadcast %130 : vector<8x1xf32> to vector<8x32xf32>
    %132 = arith.mulf %127, %131 : vector<8x32xf32>
    %133 = vector.broadcast %22 : vector<1x32xf32> to vector<8x32xf32>
    %134 = arith.mulf %132, %133 : vector<8x32xf32>
    %135 = vector.broadcast %23 : vector<1x32xf32> to vector<8x32xf32>
    %136 = arith.addf %134, %135 : vector<8x32xf32>
    %137 = arith.truncf %136 : vector<8x32xf32> to vector<8x32xbf16>
    %cst_49 = arith.constant dense<0.000000e+00> : vector<8x64xf32>
    %138 = tpu.matmul %137, %14, %cst_49 {dimension_numbers = #tpu.dot_dimension_numbers<[1], [0], [0], [1], [0, 0, 1, 1], [], []>} : vector<8x32xbf16>, vector<32x64xbf16>, vector<8x64xf32> -> vector<8x64xf32>
    %139 = vector.broadcast %16 : vector<1x64xf32> to vector<8x64xf32>
    %140 = arith.addf %138, %139 : vector<8x64xf32>
    %cst_50 = arith.constant 0.000000e+00 : f32
    %141 = vector.broadcast %cst_50 : f32 to vector<8x64xf32>
    %142 = arith.maximumf %140, %141 : vector<8x64xf32>
    %143 = arith.truncf %142 : vector<8x64xf32> to vector<8x64xbf16>
    %cst_51 = arith.constant dense<0.000000e+00> : vector<8x32xf32>
    %144 = tpu.matmul %143, %18, %cst_51 {dimension_numbers = #tpu.dot_dimension_numbers<[1], [0], [0], [1], [0, 0, 1, 1], [], []>} : vector<8x64xbf16>, vector<64x32xbf16>, vector<8x32xf32> -> vector<8x32xf32>
    %145 = vector.broadcast %24 : vector<1x32xf32> to vector<8x32xf32>
    %146 = arith.addf %144, %145 : vector<8x32xf32>
    %147 = arith.addf %146, %136 : vector<8x32xf32>
    %cst_52 = arith.constant dense<0.000000e+00> : vector<8xf32>
    %148 = vector.multi_reduction <add>, %147, %cst_52 [1] : vector<8x32xf32> to vector<8xf32>
    %149 = vector.shape_cast %148 : vector<8xf32> to vector<8x1xf32>
    %cst_53 = arith.constant 3.200000e+01 : f32
    %150 = vector.broadcast %cst_53 : f32 to vector<8x1xf32>
    %151 = arith.divf %149, %150 : vector<8x1xf32>
    %152 = vector.broadcast %151 : vector<8x1xf32> to vector<8x32xf32>
    %153 = arith.subf %147, %152 : vector<8x32xf32>
    %154 = arith.mulf %153, %153 : vector<8x32xf32>
    %cst_54 = arith.constant dense<0.000000e+00> : vector<8xf32>
    %155 = vector.multi_reduction <add>, %154, %cst_54 [1] : vector<8x32xf32> to vector<8xf32>
    %156 = vector.shape_cast %155 : vector<8xf32> to vector<8x1xf32>
    %cst_55 = arith.constant 3.200000e+01 : f32
    %157 = vector.broadcast %cst_55 : f32 to vector<8x1xf32>
    %158 = arith.divf %156, %157 : vector<8x1xf32>
    %159 = vector.broadcast %151 : vector<8x1xf32> to vector<8x32xf32>
    %160 = arith.subf %147, %159 : vector<8x32xf32>
    %cst_56 = arith.constant 9.99999974E-6 : f32
    %161 = vector.broadcast %cst_56 : f32 to vector<8x1xf32>
    %162 = arith.addf %158, %161 : vector<8x1xf32>
    %163 = math.rsqrt %162 : vector<8x1xf32>
    %164 = vector.broadcast %163 : vector<8x1xf32> to vector<8x32xf32>
    %165 = arith.mulf %160, %164 : vector<8x32xf32>
    %166 = vector.broadcast %25 : vector<1x32xf32> to vector<8x32xf32>
    %167 = arith.mulf %165, %166 : vector<8x32xf32>
    %168 = vector.broadcast %26 : vector<1x32xf32> to vector<8x32xf32>
    %169 = arith.addf %167, %168 : vector<8x32xf32>
    %c0_57 = arith.constant 0 : index
    %c0_58 = arith.constant 0 : index
    %c0_59 = arith.constant 0 : index
    %170 = vector.load %arg11[%c0_57, %c0_58, %c0_59] : memref<1x8x32xf32, #tpu.memory_space<vmem>>, vector<1x8x32xf32>
    %171 = vector.shape_cast %170 : vector<1x8x32xf32> to vector<8x32xf32>
    %172 = vector.shape_cast %169 : vector<8x32xf32> to vector<1x8x32xf32>
    tpu.vector_store %arg11[%c0_57, %c0_58, %c0_59], %172 {strides = array<i32>} : memref<1x8x32xf32, #tpu.memory_space<vmem>>, vector<1x8x32xf32>,
    return
  }
  func.func @transform_0(%arg0: i32, %arg1: i32) -> (i32, i32, i32) {
    %c0_i32 = arith.constant 0 : i32
    %c0_i32_0 = arith.constant 0 : i32
    %c0_i32_1 = arith.constant 0 : i32
    return %arg0, %c0_i32, %c0_i32_0 : i32, i32, i32
  }
  func.func @transform_1(%arg0: i32, %arg1: i32) -> (i32, i32, i32) {
    %c0_i32 = arith.constant 0 : i32
    %c0_i32_0 = arith.constant 0 : i32
    %c0_i32_1 = arith.constant 0 : i32
    return %arg0, %c0_i32, %c0_i32_0 : i32, i32, i32
  }
  func.func @transform_2(%arg0: i32, %arg1: i32) -> (i32, i32, i32) {
    %c0_i32 = arith.constant 0 : i32
    %c0_i32_0 = arith.constant 0 : i32
    %c0_i32_1 = arith.constant 0 : i32
    return %arg1, %c0_i32, %c0_i32_0 : i32, i32, i32
  }
  func.func @transform_3(%arg0: i32, %arg1: i32) -> (i32, i32, i32) {
    %c0_i32 = arith.constant 0 : i32
    %c0_i32_0 = arith.constant 0 : i32
    %c0_i32_1 = arith.constant 0 : i32
    return %arg1, %c0_i32, %c0_i32_0 : i32, i32, i32
  }
  func.func @transform_4(%arg0: i32, %arg1: i32) -> (i32, i32, i32) {
    %c0_i32 = arith.constant 0 : i32
    %c0_i32_0 = arith.constant 0 : i32
    %c0_i32_1 = arith.constant 0 : i32
    return %arg1, %c0_i32, %c0_i32_0 : i32, i32, i32
  }
  func.func @transform_5(%arg0: i32, %arg1: i32) -> (i32, i32, i32) {
    %c0_i32 = arith.constant 0 : i32
    %c0_i32_0 = arith.constant 0 : i32
    %c0_i32_1 = arith.constant 0 : i32
    return %arg1, %c0_i32, %c0_i32_0 : i32, i32, i32
  }
  func.func @transform_6(%arg0: i32, %arg1: i32) -> (i32, i32, i32) {
    %c0_i32 = arith.constant 0 : i32
    %c0_i32_0 = arith.constant 0 : i32
    %c0_i32_1 = arith.constant 0 : i32
    return %arg1, %c0_i32, %c0_i32_0 : i32, i32, i32
  }
  func.func @transform_7(%arg0: i32, %arg1: i32) -> (i32, i32, i32) {
    %c0_i32 = arith.constant 0 : i32
    %c0_i32_0 = arith.constant 0 : i32
    %c0_i32_1 = arith.constant 0 : i32
    return %arg1, %c0_i32, %c0_i32_0 : i32, i32, i32
  }
  func.func @transform_8(%arg0: i32, %arg1: i32) -> (i32, i32, i32) {
    %c0_i32 = arith.constant 0 : i32
    %c0_i32_0 = arith.constant 0 : i32
    %c0_i32_1 = arith.constant 0 : i32
    return %arg1, %c0_i32, %c0_i32_0 : i32, i32, i32
  }
  func.func @transform_9(%arg0: i32, %arg1: i32) -> (i32, i32, i32) {
    %c0_i32 = arith.constant 0 : i32
    %c0_i32_0 = arith.constant 0 : i32
    %c0_i32_1 = arith.constant 0 : i32
    return %arg0, %c0_i32, %c0_i32_0 : i32, i32, i32
  }
}

</mosaic_0001>

<bundles_post_ra>
// kernel: tpu_custom_call.1
= control target key start
LH: loop header
LB: loop body
LE: loop exit
PB: predicated region body
PF: predicated region fallthrough
CT: control target
= control target key end

     0   :  { %s2101_s0 = inlined_call_operand.hbm [shape: f32[2,8,32], index: 0, kind: input, shape index: {}]   ;;  %s2102_s1 = inlined_call_operand.vmem [shape: f32[2,1,8], index: 1, kind: input, shape index: {}]   ;;  %s2103_s2 = inlined_call_operand.vmem [shape: bf16[2,32,96], index: 2, kind: input, shape index: {}]   ;;  %s2104_s3 = inlined_call_operand.hbm [shape: f32[2,1,96], index: 3, kind: input, shape index: {}]   ;;  %s2105_s4 = inlined_call_operand.vmem [shape: bf16[2,32,32], index: 4, kind: input, shape index: {}]   ;;  %s2106_s5 = inlined_call_operand.vmem [shape: bf16[2,32,64], index: 5, kind: input, shape index: {}]   ;;  %s2107_s6 = inlined_call_operand.hbm [shape: f32[2,1,64], index: 6, kind: input, shape index: {}]   ;;  %s2108_s7 = inlined_call_operand.vmem [shape: bf16[2,64,32], index: 7, kind: input, shape index: {}]   ;;  %s2109_s8 = inlined_call_operand.vmem [shape: f32[2,6,32], index: 8, kind: input, shape index: {}]   ;;  %s2110_s9 = inlined_call_operand.hbm [shape: f32[2,8,32], index: 9, kind: output, shape index: {}]  }
   0x1   :  { %2127 = sst [smem:[#allocation26_spill]] %s2101_s0 }
   0x2   :  { %2128 = sst [smem:[#allocation27_spill]] %s2102_s1 }
   0x3   :  { %2129 = sst [smem:[#allocation28_spill]] %s2103_s2 }
   0x4   :  { %2130 = sst [smem:[#allocation29_spill]] %s2104_s3 }
   0x5   :  { %2131 = sst [smem:[#allocation30_spill]] %s2105_s4 }
   0x6   :  { %2132 = sst [smem:[#allocation31_spill]] %s2106_s5 }
   0x7   :  { %2133 = sst [smem:[#allocation32_spill]] %s2107_s6 }
   0x8   :  { %2134 = sst [smem:[#allocation33_spill]] %s2108_s7 }
   0x9   :  { %2135 = sst [smem:[#allocation34_spill]] %s2109_s8 }
   0xa   :  { %2136 = sst [smem:[#allocation35_spill]] %s2110_s9 }
   0xb   :  { %14 = vsyncpa [#allocation3], 0 }
   0xc   :  { %16 = vsyncpa [#allocation3 + $0x1], 0 }
   0xd   :  { %17 = vsyncpa [#allocation6], 0 }
   0xe   :  { %19 = vsyncpa [#allocation6 + $0x1], 0 }
   0xf   :  { %20 = vsyncpa [#allocation4], 0 }
  0x10   :  { %22 = vsyncpa [#allocation4 + $0x1], 0  ;;  %s1747_s30 = smov 0   ;;  %s1749_s10 = smov 0  }
  0x11   :  { %s1751_s11 = smov 0   ;;  %s1753_s12 = smov 0  }
  0x12   :  { %s1755_s13 = smov 0   ;;  %s1757_s14 = smov 0  }
  0x13   :  { %s1759_s15 = smov 0   ;;  %s1761_s16 = smov 0  }
  0x14   :  { %s1763_s17 = smov 0   ;;  %s1765_s18 = smov 0  }
  0x15   :  { %s1767_s19 = smov 0  }
  0x16 LB: > { %2137 = sst [smem:[#allocation12_spill]] %s1644_s10  ;;  %s1801_s20 = sadd.s32 4294967295, %s1680_s19   ;;  %s1680_s19 = sphi %s1767_s19, %s28_s19   ;;  %s1676_s18 = sphi %s1765_s18, %s2186_s18   ;;  %s1672_s17 = sphi %s1763_s17, %s2185_s17   ;;  %s1668_s16 = sphi %s1761_s16, %s2184_s16   ;;  %s1664_s15 = sphi %s1759_s15, %s2183_s15   ;;  %s1660_s14 = sphi %s1757_s14, %s2182_s14   ;;  %s1656_s13 = sphi %s1755_s13, %s2181_s13   ;;  %s1652_s12 = sphi %s1753_s12, %s2180_s12   ;;  %s1648_s11 = sphi %s1751_s11, %s2179_s11   ;;  %s1644_s10 = sphi %s1749_s10, %s2178_s10   ;;  %s1640_s30 = sphi %s1747_s30, %s2177_s30  }
  0x17   : > { %2138 = sst [smem:[#allocation13_spill]] %s1648_s11  ;;  %s37_s21 = sadd.s32 1, %s1672_s17 }
  0x18   : > { %2139 = sst [smem:[#allocation14_spill]] %s1652_s12  ;;  %p1804_p0 = scmp.ge.s32.totalorder %s37_s21, 2 }
  0x19   : > { %2140 = sst [smem:[#allocation15_spill]] %s1656_s13  ;;  %p55_p1 = scmp.eq.s32.totalorder %s1680_s19, 0 }
  0x1a   : > { %2141 = sst [smem:[#allocation16_spill]] %s1660_s14  ;;  %p61_p2 = scmp.eq.s32.totalorder %s1801_s20, 0 }
  0x1b   : > { %2142 = sst [smem:[#allocation17_spill]] %s1664_s15  ;;  %s125_s23 = sadd.s32 1, %s1648_s11 }
  0x1c   : > { %2143 = sst [smem:[#allocation18_spill]] %s1672_s17  ;;  %s2188_s21 = smov (%p1804_p0, %s37_s21), 0 }
  0x1d   : > { %2144 = sst [smem:[#allocation19_spill]] %s1676_s18  ;;  %p132_p3 = scmp.ne.s32.totalorder %s1648_s11, %s1644_s10 }
  0x1e   : > { %2146 = sst [smem:[#allocation20_spill]] %s2188_s21  ;;  %p138_p4 = scmp.ne.s32.totalorder %s1644_s10, %s1640_s30 }
  0x1f   : > { %s122_s24 = ssub.s32 %s1672_s17, %s2188_s21  ;;  %p134_p6 = por %p132_p3, %p55_p1 }
  0x20   : > { %p123_p5 = scmp.eq.s32.totalorder %s122_s24, 0  ;;  %p1824_p7 = por %p138_p4, %p61_p2 }
  0x21   : > { %p2114_p8 = scmp.lt.s32.totalorder %s1680_s19, 4  ;;  %s351_s27 = sand.u32 1, %s1680_s19  }
  0x22   : > { %s1830_s26 = scalar_select %p123_p5, %s1648_s11, %s125_s23  }
  0x23   : > { %s2113_s28 = sand.u32 1, %s1648_s11   ;;  %s2149_s3 = sld [smem:[#allocation29_spill]] }
  0x24   : > { %2148 = sst [smem:[#allocation21_spill]] %s1830_s26  ;;  %s354_s21 = scalar_lea.vmem [#allocation5], %s2113_s28 }
  0x25   : > { %s361_s9 = sshll.u32 %s354_s21, 4  ;;  %p1842_p9 = pnand %p2114_p8, %p134_p6  ;;  %s362_s9 = int_to_ptr.vmem [resolvable:$true] %s361_s9 }
  0x26   : > { %p1229_p10 = scmp.ge.s32.totalorder %s1680_s19, 1  ;;  %p414_p11 = scmp.lt.s32.totalorder %s1680_s19, 5 }
  0x27   : > { %s1848_s29 = scalar_lea.sflag [#allocation6], %s351_s27  ;;  %s1224_s30 = sadd.s32 4294967294, %s1680_s19  }
  0x28   : > { %p1853_p12 = pnand %p1229_p10, %p414_p11  ;;  %s47_s28 = sadd.s32 1, %s1660_s14 }
  0x29   : > { %s357_s24 = scalar_lea.hbm %s2149_s3, %s1672_s17  ;;  %p54_p13 = scmp.ne.s32.totalorder %s1660_s14, %s1656_s13 }
  0x2a   : > { %s359_s8 = sshll.u32 %s357_s24, 4  ;;  %s40_s24 = sadd.s32 1, %s1676_s18  ;;  %s360_s8 = int_to_ptr.hbm [resolvable:$true] %s359_s8 }
  0x2b   : > { %1326 = dma.hbm_to_vmem [thread:$0]  (!%p1842_p9), %s360_s8, 16, %s362_s9, %s1848_s29  }
  0x2c   : > { %s2190_s24 = smov (!%p1804_p0, %s40_s24), %s1676_s18  ;;  %p60_p3 = scmp.ne.s32.totalorder %s1656_s13, %s1652_s12 }
  0x2d   : > { %p42_p4 = scmp.ge.s32.totalorder %s2190_s24, 2  ;;  %p292_p5 = scmp.eq.s32.totalorder %s1801_s20, 3 }
  0x2e   : > { %p1870_p6 = por %p55_p1, %p54_p13  ;;  %p1876_p10 = por %p61_p2, %p60_p3 }
  0x2f   : > { %s2192_s24 = smov (%p42_p4, %s2190_s24), 0  ;;  %p1882_p0 = por %p292_p5, %p54_p13 }
  0x30   : > { %2154 = sst [smem:[#allocation22_spill]] %s2192_s24  ;;  %p298_p11 = scmp.eq.s32.totalorder %s1224_s30, 3 }
  0x31   : > { %s2155_s9 = scalar_select %p1882_p0, 1, 0 }
  0x32   : > { %s44_s22 = ssub.s32 %s1676_s18, %s2192_s24  ;;  %s318_s3 = sand.u32 1, %s1660_s14  }
  0x33   : > { %2156 = sst [smem:[#allocation23_spill]] %s2155_s9  ;;  %p45_p1 = scmp.eq.s32.totalorder %s44_s22, 0 }
  0x34   : > { %p1889_p8 = por %p298_p11, %p60_p3  ;;  %s1227_s12 = sshll.u32 %s318_s3, 3 }
  0x35   : > { %s1894_s7 = scalar_select %p45_p1, %s1660_s14, %s47_s28  }
  0x36   : > { %s2157_s26 = scalar_select %p1889_p8, 1, 0 }
  0x37   : > { %2159 = sst [smem:[#allocation25_spill]] %s1894_s7  ;;  %s1228_s5 = sshll.u32 %s1676_s18, 3 }
  0x38   : > { %2158 = sst [smem:[#allocation24_spill]] %s2157_s26  ;;  %s322_s1 = scalar_lea.vmem [#allocation2], %s1227_s12 }
  0x39   : > { %s2160_s0 = sld [smem:[#allocation26_spill]]  ;;  %s330_s30 = sshll.u32 %s322_s1, 4  ;;  %s331_s30 = int_to_ptr.vmem [resolvable:$true] %s330_s30 }
  0x3a   : > { %p2161_p2 = scmp.lt.s32.totalorder %s1680_s19, 4  ;;  %s2162_s6 = sld [smem:[#allocation32_spill]] }
  0x3b   : > { %s2163_s7 = sand.u32 1, %s1648_s11   ;;  %s319_s2 = scalar_lea.sflag [#allocation3], %s318_s3 }
  0x3c   : > { %p1321_p13 = pnand %p2161_p2, %p1870_p6  ;;  %s387_s18 = scalar_lea.vmem [#allocation7], %s2163_s7 }
  0x3d   : > { %s394_s14 = sshll.u32 %s387_s18, 4  ;;  %s1916_s1 = sand.u32 (!%p1853_p12), 1, %s1656_s13   ;;  %s395_s14 = int_to_ptr.vmem [resolvable:$true] %s394_s14 }
  0x3e   : > { %s1230_s4 = sshll.u32 (!%p1853_p12), %s1916_s1, 3 }
  0x3f   : > { %s326_s9 = scalar_lea.hbm %s2160_s0, %s1228_s5  ;;  %418 = sbr.rel (%p1853_p12) target bundleno = 1980 (0x7bc), region = 56 }
  0x40   : > { %s328_s15 = sshll.u32 %s326_s9, 4  ;;  %s390_s28 = scalar_lea.hbm %s2162_s6, %s1672_s17  ;;  %s329_s15 = int_to_ptr.hbm [resolvable:$true] %s328_s15 }
  0x41   : > { %s392_s26 = sshll.u32 %s390_s28, 4  ;;  %s421_s5 = scalar_lea.sflag (!%p1853_p12), [#allocation3], %s1916_s1  ;;  %s393_s26 = int_to_ptr.hbm [resolvable:$true] %s392_s26 }
  0x42   : > { %1323 = dma.hbm_to_vmem [thread:$0]  (!%p1321_p13), %s329_s15, 128, %s331_s30, %s319_s2  }
  0x43   : > { %1329 = dma.hbm_to_vmem [thread:$0]  (!%p1842_p9), %s393_s26, 16, %s395_s14, %s1848_s29  }
  0x44   : > { %s424_s7 = scalar_lea.vmem [#allocation2], %s1230_s4 }
  0x45   : > { %1627 = dma.done.wait (%p1876_p10), %s421_s5, 128  }
  0x46   : > { %1629 = vsyncadd (%p1876_p10), %s421_s5, 4294967168  ;;  %s430_s3 = sand.u32 1, %s1801_s20   ;;  %s432_s12 = sand.u32 1, %s1644_s10  }
  0x47   : > { %s431_s14 = scalar_lea.sflag [#allocation6], %s430_s3  ;;  %s1926_s15 = scalar_lea.vmem [#allocation5], %s432_s12 }
  0x48   : > { %1631 = dma.done.wait (%p1824_p7), %s431_s14, 32  }
  0x49   : > { %1633 = vsyncadd (%p1824_p7), %s431_s14, 4294967264  ;;  %s2164_s18 = sld [smem:[#allocation17_spill]]  ;;  %p513_p9 = scmp.lt.s32.totalorder %s1668_s16, 1 }
  0x4a   : > { %s2166_s25 = sld [smem:[#allocation28_spill]]  ;;  %s1967_s28 = scalar_lea.vmem [#allocation8], %s1230_s4 }
  0x4b   : > { %s1935_s26 = scalar_select %p513_p9, %s1668_s16, 1 }
  0x4c   : > { %s2167_s5 = sld [smem:[#allocation30_spill]] }
  0x4d   : > { %s2168_s6 = sld [smem:[#allocation31_spill]] }
  0x4e   : > { %s2169_s20 = sld [smem:[#allocation33_spill]] }
  0x4f   : > { %p516_p12 = scmp.lt.s32.totalorder %s2164_s18, 1  ;;  %s2170_s9 = sld [smem:[#allocation34_spill]] }
  0x50   : > { %p1241_p7 = scmp.ne.s32.totalorder %s2164_s18, 0 }
  0x51   : > { %s517_s23 = scalar_select %p516_p12, %s2164_s18, 1 }
  0x53   : > { %s1298_s27 = sshll.u32 %s517_s23, 4  ;;  %s1301_s8 = sshll.u32 %s517_s23, 5 }
  0x54   : > { %s520_s22 = scalar_lea.vmem %s2166_s25, %s1298_s27  ;;  %s1948_s3 = scalar_lea.vmem %s2167_s5, %s1298_s27 }
  0x55   : > { %s1953_s17 = scalar_lea.vmem %s2168_s6, %s1298_s27  ;;  %s1958_s29 = scalar_lea.vmem %s2169_s20, %s1301_s8 }
  0x56   : > { %s1240_s21 = sshll.u32 %s517_s23, 3  ;;  %s1965_s25 = scalar_lea.vmem [#allocation7], %s432_s12 }
  0x57   : > { %s1963_s30 = scalar_lea.vmem %s2170_s9, %s1240_s21  ;;  %544 = sbr.rel (%p1241_p7) target bundleno = 94 (0x5e), region = 72 }
  0x5c   : > { %v545_v0 = vld [vmem:[%s424_s7] sm:$0xff]  ;;  %vm546_vm0 = vcmask 261120  }
  0x5d   : > { %547 = vst.msk [vmem:[%s1967_s28] sm:$0xff] %vm546_vm0, %v545_v0 }
  0x5e PF: > { %v1303_v1 = vld [vmem:[%s520_s22 + $0x8] sm:$0xff]  ;;  %v1302_v2 = vld [vmem:[%s520_s22] sm:$0xff]  ;;  %vm589_vm1 = vcmask 261120   ;;  %s1682_s0 = smov 104   ;;  %s1683_s6 = smov 120   ;;  %vm615_vm2 = vcmask 64512  }
  0x5f   : > { %599 = vmatpush.bf16.msra.mxu0 %v1303_v1  ;;  %v1439_v5 = vld [vmem:[%s1926_s15] ss:$0 sm:$0xff]  ;;  %s1684_s10 = smov 96   ;;  %s1685_s11 = smov 80   ;;  %vm652_vm3 = vcmask 1043456   ;;  %vm850_vm4 = vcmask 130048  }
  0x60   : > { %s1686_s13 = smov 72   ;;  %s1687_s4 = smov 88   ;;  %vm852_vm5 = vcmask 195584   ;;  %vm977_vm10 = vcmask 523264  }
  0x61   : > { %s1688_s7 = smov 112   ;;  %s2171_s18 = sld [smem:[#allocation27_spill]] }
  0x62   : > { %s1690_s24 = smov 40   ;;  %s1691_s27 = smov 56  }
  0x63   : > { %600 = vmatpush.bf16.msra.mxu0 %v1302_v2  ;;  %s1692_s8 = smov 48   ;;  %s1693_s22 = smov 8  }
  0x64   : > { %v1972_v3 = vld [vmem:[%s1967_s28] sm:$0xff]  ;;  %s1694_s2 = smov 16   ;;  %s1695_s5 = smov 24  }
  0x65   : > { %v573_v4 = vpack.c.bf16 %v1972_v3, %v1972_v3  ;;  %s2173_s20 = sld [smem:[#allocation35_spill]]  ;;  %s1035_s9 = sshll.u32 %s1967_s28, 4  ;;  %s1036_s9 = int_to_ptr.vmem [resolvable:$true] %s1035_s9 }
  0x67   : > { %1250 = vmatmul.msk.bf16.vlgmr.msra.gmra.mxu0 %vm589_vm1, %v573_v4  ;;  %s2172_s23 = scalar_lea.vmem %s2171_s18, %s1935_s26  ;;  %s1689_s26 = smov 64  }
  0x68   : > { %v1440_v23 = vld [vmem:[%s2172_s23] ss:$0 sm:$0xff] }
  0xe4   : > { %v602_v6 = vpop.f32.mrf.mxu0 }
  0xe5   : > { %v603_v7 = vadd.f32 %v1439_v5, %v602_v6 }
  0xe7   : > { %v606_v8 = vpack.c.bf16 %v603_v7, %v603_v7 }
  0xe9   : > { %v611_v9 = vunpack.c.l.b16 %v606_v8 }
  0xeb   : > { %v1978_v10 = vpack.c.b16 %v611_v9, %v611_v9 }
  0xec   : > { %v604_v11 = vpop.f32.mrf.mxu0 }
  0xed   : > { %781 = vrot.lane.b32.xlu2 %v1978_v10, %s1682_s0  ;;  %669 = vrot.lane.b32.xlu1 %v1978_v10, %s1683_s6 }
  0xee   : > { %613 = vrot.lane.b32.xlu0 %v1978_v10, %s1684_s10 }
  0xf5   : > { %727 = vrot.lane.b32.xlu2 %v1978_v10, %s1685_s11  ;;  %783 = vrot.lane.b32.xlu1 %v1978_v10, %s1686_s13  ;;  %s1574_s11 = scalar_lea.hbm %s2173_s20, 16 }
  0xf6   : > { %671 = vrot.lane.b32.xlu0 %v1978_v10, %s1687_s4 }
  0xfe   : > { %725 = vrot.lane.b32.xlu0 %v1978_v10, %s1688_s7 }
 0x147   : > { %v782_v12 = vpop.permute.xlu2 %781 }
 0x14f   : > { %v728_v13 = vpop.permute.xlu2 %727 }
 0x150   : > { %v733_v14 = vsel %vm615_vm2, %v728_v13, 0 }
 0x151   : > { %742 = vmatpush.bf16.xpose.msrb.mxu0 %v733_v14 }
 0x15f   : > { %v670_v15 = vpop.permute.xlu1 %669 }
 0x160   : > { %v614_v16 = vpop.permute.xlu0 %613 }
 0x161   : > { %v620_v17 = vsel %vm615_vm2, %v614_v16, 0 }
 0x162   : > { %629 = vmatpush.bf16.xpose.msra.mxu1 %v620_v17 }
 0x167   : > { %v784_v18 = vpop.permute.xlu1 %783 }
 0x168   : > { %v672_v19 = vpop.permute.xlu0 %671  ;;  %v789_v20 = vsel %vm615_vm2, %v784_v18, 0 }
 0x169   : > { %1251 = vmatmul.msk.bf16.vlgmr.msra.gmra.mxu1 %vm615_vm2, %v606_v8  ;;  %v677_v21 = vsel %vm615_vm2, %v672_v19, 0 }
 0x16a   : > { %686 = vmatpush.bf16.xpose.msra.mxu3 %v677_v21 }
 0x170   : > { %v726_v22 = vpop.permute.xlu0 %725 }
 0x171   : > { %1253 = vmatmul.msk.bf16.vlgmr.msra.gmra.mxu3 %vm615_vm2, %v670_v15  ;;  %1255 = vmatmul.msk.bf16.vlgmr.msrb.gmra.mxu0 %vm615_vm2, %v726_v22 }
 0x172   : > { %798 = vmatpush.bf16.xpose.msrb.mxu3 %v789_v20 }
 0x181   : > { %1257 = vmatmul.msk.bf16.vlgmr.msrb.gmra.mxu3 %vm615_vm2, %v782_v12 }
 0x1e6   : > { %v631_v24 = vpop.f32.mrf.mxu1 }
 0x1e7   : > { %v632_v25 = vadd.f32 %v1440_v23, %v631_v24 }
 0x1e9   : > { %v635_v26 = vsel %vm615_vm2, %v632_v25, -inf }
 0x1ea   : > { %636 = vmax.xlane.f32.xlu1 %v635_v26 }
 0x1ee   : > { %v633_v27 = vpop.f32.mrf.mxu1  ;;  %v744_v28 = vpop.f32.mrf.mxu0 }
 0x1ef   : > { %v745_v33 = vadd.f32 %v1440_v23, %v744_v28 }
 0x1f1   : > { %v748_v35 = vsel %vm615_vm2, %v745_v33, -inf }
 0x1f4   : > { %v688_v29 = vpop.f32.mrf.mxu3 }
 0x1f5   : > { %v689_v30 = vadd.f32 %v1440_v23, %v688_v29  ;;  %v1305_v29 = vld [vmem:[%s1948_s3 + $0x8] sm:$0xff] }
 0x1f6   : > { %v746_v31 = vpop.f32.mrf.mxu0  ;;  %877 = vmatpush.bf16.msra.mxu0 %v1305_v29 }
 0x1f7   : > { %v692_v32 = vsel %vm615_vm2, %v689_v30, -inf }
 0x1f8   : > { %693 = vmax.xlane.f32.xlu2 %v692_v32 }
 0x1fc   : > { %v690_v34 = vpop.f32.mrf.mxu3 }
 0x200   : > { %749 = vmax.xlane.f32.xlu2 %v748_v35 }
 0x204   : > { %v800_v36 = vpop.f32.mrf.mxu3 }
 0x205   : > { %v801_v37 = vadd.f32 %v1440_v23, %v800_v36 }
 0x207   : > { %v804_v38 = vsel %vm615_vm2, %v801_v37, -inf }
 0x208   : > { %805 = vmax.xlane.f32.xlu0 %v804_v38  ;;  %v2025_v38 = vld [vmem:[%s1963_s30] sm:$0x3f] }
 0x20c   : > { %v802_v39 = vpop.f32.mrf.mxu3 }
 0x20d   : > { %v855_v39 = vperm.slane %v2025_v38, 0 }
 0x218   : > { %647 = vrot.lane.b32.xlu2 %v1978_v10, %s1689_s26 }
 0x220   : > { %816 = vrot.lane.b32.xlu2 %v1978_v10, %s1690_s24 }
 0x25d   : > { %v637_v40 = vpop.xlane.xlu1 %636 }
 0x25e   : > { %v638_v41 = vsub.f32 %v632_v25, %v637_v40 }
 0x260   : > { %v639_v42 = vmul.f32 1.442695, %v638_v41 }
 0x262   : > { %1442 = vpow2.f32 %v639_v42 }
 0x268   : > { %v1443_v43 = vpop.eup %1442 }
 0x269   : > { %v641_v44 = vsel %vm615_vm2, %v1443_v43, 0.0 }
 0x26a   : > { %642 = vadd.xlane.f32.xlu1 %v641_v44 }
 0x26b   : > { %v694_v45 = vpop.xlane.xlu2 %693 }
 0x26c   : > { %v695_v48 = vsub.f32 %v689_v30, %v694_v45  ;;  %v1304_v30 = vld [vmem:[%s1948_s3] sm:$0xff]  ;;  %v1696_v45 = vmov 32.0  }
 0x26d   : > { %878 = vmatpush.bf16.msra.mxu0 %v1304_v30 }
 0x26e   : > { %v696_v50 = vmul.f32 1.442695, %v695_v48 }
 0x273   : > { %v750_v46 = vpop.xlane.xlu2 %749 }
 0x274   : > { %v751_v47 = vsub.f32 %v745_v33, %v750_v46 }
 0x276   : > { %v752_v49 = vmul.f32 1.442695, %v751_v47 }
 0x278   : > { %1444 = vpow2.f32 %v752_v49 }
 0x279   : > { %1446 = vpow2.f32 %v696_v50 }
 0x27b   : > { %v648_v51 = vpop.permute.xlu2 %647  ;;  %v806_v52 = vpop.xlane.xlu0 %805 }
 0x27c   : > { %v654_v53 = vsel %vm652_vm3, %v648_v51, 0  ;;  %v807_v55 = vsub.f32 %v801_v37, %v806_v52 }
 0x27d   : > { %663 = vmatpush.bf16.msra.mxu2 %v654_v53 }
 0x27e   : > { %v1445_v54 = vpop.eup %1444  ;;  %v808_v57 = vmul.f32 1.442695, %v807_v55 }
 0x27f   : > { %v754_v56 = vsel %vm615_vm2, %v1445_v54, 0.0  ;;  %v1447_v58 = vpop.eup %1446 }
 0x280   : > { %755 = vadd.xlane.f32.xlu0 %v754_v56  ;;  %1448 = vpow2.f32 %v808_v57  ;;  %v698_v59 = vsel %vm615_vm2, %v1447_v58, 0.0  ;;  %v1307_v56 = vld [vmem:[%s1953_s17 + $0x8] sm:$0xff]  ;;  %v1306_v57 = vld [vmem:[%s1953_s17] sm:$0xff]  ;;  %s1295_s17 = sshll.u32 %s1668_s16, 3  ;;  %s1023_s16 = scalar_lea.sflag [#allocation4], %s1916_s1 }
 0x283   : > { %704 = vrot.lane.b32.xlu1 %v1978_v10, %s1691_s27  ;;  %v817_v4 = vpop.permute.xlu2 %816 }
 0x284   : > { %v822_v7 = vsel %vm652_vm3, %v817_v4, 0 }
 0x286   : > { %v1449_v60 = vpop.eup %1448 }
 0x287   : > { %v810_v61 = vsel %vm615_vm2, %v1449_v60, 0.0 }
 0x288   : > { %699 = vadd.xlane.f32.xlu0 %v698_v59 }
 0x290   : > { %811 = vadd.xlane.f32.xlu0 %v810_v61  ;;  %v1310_v61 = vld [vmem:[%s1958_s29 + $0x10] sm:$0xff] }
 0x2a4   : > { %760 = vrot.lane.b32.xlu0 %v1978_v10, %s1692_s8 }
 0x2dd   : > { %v643_v62 = vpop.xlane.xlu1 %642 }
 0x2de   : > { %1450 = vrcp.f32 %v643_v62 }
 0x2e4   : > { %v1451_v63 = vpop.eup %1450 }
 0x2e5   : > { %v645_v0 = vmul.f32 %v1451_v63, %v1443_v43  ;;  %v1309_v63 = vld [vmem:[%s1958_s29 + $0x8] sm:$0xff] }
 0x2e7   : > { %v646_v1 = vpack.c.bf16 %v645_v0, %v645_v0 }
 0x2e9   : > { %1252 = vmatmul.msk.bf16.vlgmr.msra.gmra.mxu2 %vm615_vm2, %v646_v1 }
 0x2f3   : > { %v756_v2 = vpop.xlane.xlu0 %755 }
 0x2f5   : > { %v705_v5 = vpop.permute.xlu1 %704 }
 0x2f6   : > { %v710_v6 = vsel %vm652_vm3, %v705_v5, 0 }
 0x2f7   : > { %719 = vmatpush.bf16.msrb.mxu2 %v710_v6 }
 0x2fb   : > { %831 = vmatpush.bf16.msra.mxu2 %v822_v7  ;;  %v700_v8 = vpop.xlane.xlu0 %699  ;;  %v914_v7 = vperm.slane %v2025_v38, 1 }
 0x2fc   : > { %1452 = vrcp.f32 %v700_v8 }
 0x302   : > { %v1453_v9 = vpop.eup %1452 }
 0x303   : > { %v702_v10 = vmul.f32 %v1453_v9, %v1447_v58  ;;  %v812_v11 = vpop.xlane.xlu0 %811  ;;  %v1311_v58 = vld [vmem:[%s1958_s29 + $0x18] sm:$0xff]  ;;  %v916_v9 = vperm.slane %v2025_v38, 2 }
 0x304   : > { %1454 = vrcp.f32 %v812_v11  ;;  %985 = vmatpush.bf16.msra.mxu3 %v1311_v58 }
 0x305   : > { %v703_v12 = vpack.c.bf16 %v702_v10, %v702_v10  ;;  %1456 = vrcp.f32 %v756_v2 }
 0x306   : > { %1458 = vrcp.f32 %v1696_v45  ;;  %v1019_v45 = vperm.slane %v2025_v38, 5 }
 0x307   : > { %1254 = vmatmul.msk.bf16.vlgmr.msrb.gmra.mxu2 %vm615_vm2, %v703_v12 }
 0x308   : > { %986 = vmatpush.bf16.msra.mxu3 %v1310_v61 }
 0x30a   : > { %v1455_v13 = vpop.eup %1454 }
 0x30b   : > { %v814_v14 = vmul.f32 %v1455_v13, %v1449_v60  ;;  %v1457_v15 = vpop.eup %1456 }
 0x30c   : > { %v758_v16 = vmul.f32 %v1457_v15, %v1445_v54  ;;  %v1459_v46 = vpop.eup %1458  ;;  %987 = vmatpush.bf16.msra.mxu3 %v1309_v63  ;;  %v1441_v15 = vld [vmem:[%s1965_s25] ss:$0 sm:$0xff] }
 0x30d   : > { %v815_v17 = vpack.c.bf16 %v814_v14, %v814_v14  ;;  %v889_v47 = vmul.f32 32.0, %v1459_v46  ;;  %vm893_vm6 = vweird.f32 %v1459_v46  ;;  %v1308_v14 = vld [vmem:[%s1958_s29] sm:$0xff]  ;;  %s1033_s29 = scalar_lea.hbm %s2173_s20, %s1295_s17 }
 0x30e   : > { %v759_v20 = vpack.c.bf16 %v758_v16, %v758_v16  ;;  %s1037_s30 = sshll.u32 %s1033_s29, 4  ;;  %s1038_s30 = int_to_ptr.hbm [resolvable:$true] %s1037_s30 }
 0x30f   : > { %v890_v48 = vsub.f32 1.0, %v889_v47  ;;  %s1568_s25 = sshra.s32 %s1038_s30, 4  ;;  %s1569_s25 = int_to_ptr.hbm [resolvable:$true] %s1568_s25 }
 0x310   : > { %988 = vmatpush.bf16.msra.mxu3 %v1308_v14  ;;  %s1570_s0 = scalar_lea.hbm %s1569_s25, 8  ;;  %p1575_p6 = scmp.lt.s32.totalorder %s1569_s25, %s2173_s20 }
 0x311   : > { %v891_v49 = vmul.f32 %v1459_v46, %v890_v48  ;;  %p1571_p3 = scmp.ne.s32.totalorder %s1569_s25, %s1570_s0  ;;  %p1576_p10 = scmp.lt.s32.totalorder %s1574_s11, %s1570_s0 }
 0x313   : > { %v892_v50 = vadd.f32 %v1459_v46, %v891_v49  ;;  %p1572_p4 = pnand %p1571_p3, %p1882_p0  ;;  %p1577_p11 = por %p1576_p10, %p1575_p6 }
 0x315   : > { %v894_v51 = vsel %vm893_vm6, %v1459_v46, %v892_v50  ;;  %p1573_p5 = pneg %p1572_p4 }
 0x316   : > { %v761_v18 = vpop.permute.xlu0 %760 }
 0x317   : > { %1258 = vmatmul.msk.bf16.vlgmr.msra.gmra.mxu2 %vm615_vm2, %v815_v17  ;;  %v766_v19 = vsel %vm652_vm3, %v761_v18, 0  ;;  %p1578_p1 = pnand %p1577_p11, %p1573_p5 }
 0x318   : > { %775 = vmatpush.bf16.msrb.mxu1 %v766_v19 }
 0x31b   : > { %1256 = vmatmul.msk.bf16.vlgmr.msrb.gmra.mxu1 %vm615_vm2, %v759_v20 }
 0x31c   : > { %943 = vmatpush.bf16.msra.mxu1 %v1307_v56 }
 0x320   : > { %944 = vmatpush.bf16.msra.mxu1 %v1306_v57 }
 0x36c   : > { %v665_v21 = vpop.f32.mrf.mxu2 }
 0x374   : > { %v667_v22 = vpop.f32.mrf.mxu2 }
 0x38a   : > { %v721_v23 = vpop.f32.mrf.mxu2 }
 0x38b   : > { %838 = vrot.lane.b32.xlu1 %v721_v23, %s1693_s22 }
 0x392   : > { %v723_v24 = vpop.f32.mrf.mxu2 }
 0x398   : > { %v777_v25 = vpop.f32.mrf.mxu1 }
 0x399   : > { %842 = vrot.lane.b32.xlu2 %v777_v25, %s1694_s2 }
 0x39a   : > { %v833_v26 = vpop.f32.mrf.mxu2 }
 0x39b   : > { %846 = vrot.lane.b32.xlu1 %v833_v26, %s1695_s5 }
 0x3a0   : > { %v779_v27 = vpop.f32.mrf.mxu1 }
 0x3a2   : > { %v835_v28 = vpop.f32.mrf.mxu2 }
 0x3f3   : > { %v843_v33 = vpop.permute.xlu2 %842 }
 0x3fd   : > { %v839_v31 = vpop.permute.xlu1 %838 }
 0x3fe   : > { %v849_v32 = vsel %vm615_vm2, %v665_v21, %v839_v31  ;;  %v952_v21 = vperm.slane %v2025_v38, 3 }
 0x3ff   : > { %v851_v35 = vsel %vm850_vm4, %v849_v32, %v843_v33 }
 0x40d   : > { %v847_v34 = vpop.permute.xlu1 %846 }
 0x40e   : > { %v853_v36 = vsel %vm852_vm5, %v851_v35, %v847_v34 }
 0x40f   : > { %v854_v37 = vpack.c.bf16 %v853_v36, %v853_v36 }
 0x411   : > { %1267 = vmatmul.msk.bf16.vlgmr.msra.gmra.mxu0 %vm589_vm1, %v854_v37 }
 0x48e   : > { %v880_v40 = vpop.f32.mrf.mxu0 }
 0x48f   : > { %v881_v41 = vadd.f32 %v880_v40, %v855_v39 }
 0x491   : > { %v884_v42 = vadd.f32 %v881_v41, %v1972_v3 }
 0x493   : > { %v885_v43 = vsel %vm589_vm1, %v884_v42, 0.0 }
 0x494   : > { %886 = vadd.xlane.f32.xlu2 %v885_v43 }
 0x496   : > { %v882_v44 = vpop.f32.mrf.mxu0 }
 0x507   : > { %v887_v52 = vpop.xlane.xlu2 %886 }
 0x508   : > { %v895_v53 = vmul.f32 %v894_v51, %v887_v52 }
 0x50a   : > { %v896_v3 = vsub.f32 %v884_v42, %v895_v53  ;;  %v1017_v42 = vperm.slane %v2025_v38, 4 }
 0x50c   : > { %v897_v54 = vmul.f32 %v896_v3, %v896_v3 }
 0x50e   : > { %v898_v55 = vsel %vm589_vm1, %v897_v54, 0.0 }
 0x50f   : > { %899 = vadd.xlane.f32.xlu1 %v898_v55 }
 0x582   : > { %v900_v59 = vpop.xlane.xlu1 %899 }
 0x583   : > { %v901_v60 = vmul.f32 %v900_v59, %v894_v51 }
 0x585   : > { %v902_v62 = vadd.f32 1e-05, %v901_v60 }
 0x587   : > { %1460 = vrsqrt.f32 %v902_v62  ;;  %vm909_vm8 = vweird.f32 %v902_v62 }
 0x58d   : > { %v1461_v0 = vpop.eup %1460 }
 0x58e   : > { %v904_v1 = vmul.f32 %v1461_v0, %v902_v62  ;;  %vm910_vm7 = vweird.f32 %v1461_v0 }
 0x58f   : > { %vm911_vm9 = vmor %vm909_vm8, %vm910_vm7 }
 0x590   : > { %v905_v2 = vmul.f32 %v1461_v0, %v904_v1 }
 0x592   : > { %v906_v4 = vmul.f32 0.5, %v905_v2 }
 0x594   : > { %v907_v5 = vsub.f32 1.5, %v906_v4 }
 0x596   : > { %v908_v6 = vmul.f32 %v1461_v0, %v907_v5 }
 0x598   : > { %v912_v8 = vsel %vm911_vm9, %v1461_v0, %v908_v6 }
 0x599   : > { %v913_v10 = vmul.f32 %v912_v8, %v896_v3 }
 0x59b   : > { %v915_v11 = vmul.f32 %v914_v7, %v913_v10 }
 0x59d   : > { %v917_v12 = vadd.f32 %v916_v9, %v915_v11 }
 0x59f   : > { %v918_v13 = vpack.c.bf16 %v917_v12, %v917_v12 }
 0x5a1   : > { %1276 = vmatmul.msk.bf16.vlgmr.msra.gmra.mxu1 %vm589_vm1, %v918_v13 }
 0x61e   : > { %v946_v16 = vpop.f32.mrf.mxu1 }
 0x61f   : > { %v947_v17 = vadd.f32 %v1441_v15, %v946_v16 }
 0x621   : > { %v950_v18 = vmax.f32 %v947_v17, 0.0 }
 0x623   : > { %v951_v19 = vpack.c.bf16 %v950_v18, %v950_v18 }
 0x625   : > { %1293 = vmatmul.msk.bf16.vlgmr.msra.gmra.mxu3 %vm977_vm10, %v951_v19 }
 0x626   : > { %v948_v20 = vpop.f32.mrf.mxu1 }
 0x6a8   : > { %v990_v22 = vpop.f32.mrf.mxu3 }
 0x6a9   : > { %v991_v23 = vadd.f32 %v990_v22, %v952_v21 }
 0x6ab   : > { %v994_v24 = vadd.f32 %v991_v23, %v917_v12 }
 0x6ad   : > { %v995_v25 = vsel %vm589_vm1, %v994_v24, 0.0 }
 0x6ae   : > { %996 = vadd.xlane.f32.xlu0 %v995_v25 }
 0x6b0   : > { %v992_v26 = vpop.f32.mrf.mxu3 }
 0x721   : > { %v997_v27 = vpop.xlane.xlu0 %996 }
 0x722   : > { %v998_v28 = vmul.f32 %v997_v27, %v894_v51 }
 0x724   : > { %v999_v29 = vsub.f32 %v994_v24, %v998_v28 }
 0x726   : > { %v1000_v30 = vmul.f32 %v999_v29, %v999_v29 }
 0x728   : > { %v1001_v31 = vsel %vm589_vm1, %v1000_v30, 0.0 }
 0x729   : > { %1002 = vadd.xlane.f32.xlu2 %v1001_v31 }
 0x79c   : > { %v1003_v32 = vpop.xlane.xlu2 %1002 }
 0x79d   : > { %v1004_v33 = vmul.f32 %v1003_v32, %v894_v51 }
 0x79f   : > { %v1005_v34 = vadd.f32 1e-05, %v1004_v33 }
 0x7a1   : > { %1462 = vrsqrt.f32 %v1005_v34  ;;  %vm1012_vm12 = vweird.f32 %v1005_v34 }
 0x7a7   : > { %v1463_v35 = vpop.eup %1462 }
 0x7a8   : > { %v1007_v36 = vmul.f32 %v1463_v35, %v1005_v34  ;;  %vm1013_vm11 = vweird.f32 %v1463_v35 }
 0x7a9   : > { %vm1014_vm13 = vmor %vm1012_vm12, %vm1013_vm11 }
 0x7aa   : > { %v1008_v37 = vmul.f32 %v1463_v35, %v1007_v36 }
 0x7ac   : > { %v1009_v39 = vmul.f32 0.5, %v1008_v37 }
 0x7ae   : > { %v1010_v40 = vsub.f32 1.5, %v1009_v39 }
 0x7b0   : > { %v1011_v41 = vmul.f32 %v1463_v35, %v1010_v40 }
 0x7b2   : > { %v1015_v43 = vsel %vm1014_vm13, %v1463_v35, %v1011_v41 }
 0x7b3   : > { %v1016_v44 = vmul.f32 %v1015_v43, %v999_v29 }
 0x7b5   : > { %v1018_v46 = vmul.f32 %v1017_v42, %v1016_v44 }
 0x7b7   : > { %v1020_v47 = vadd.f32 %v1019_v45, %v1018_v46 }
 0x7b9   : > { %1021 = vst.msk [vmem:[%s1967_s28] sm:$0xff] %vm589_vm1, %v1020_v47 }
 0x7ba   : > { %1581 = shalt.err (!%p1578_p1)
}
 0x7bb   : > { %1318 = dma.vmem_to_hbm [thread:$0]  (%p1882_p0), %s1036_s9, 128, %s1038_s30, %s1023_s16  }
 0x7bc PF: > { %s2175_s1 = sld [smem:[#allocation14_spill]]  ;;  %p1335_p2 = scmp.ge.s32.totalorder %s1680_s19, 2 }
 0x7be   : > { %p1331_p13 = pnand %p1335_p2, %p1889_p8 }
 0x7c0   : > { %p1332_p9 = pneg %p1331_p13 }
 0x7c2   : > { %s1049_s7 = sand.u32 1, %s2175_s1  }
 0x7c3   : > { %s1050_s12 = scalar_lea.sflag [#allocation4], %s1049_s7 }
 0x7c4   : > { %1635 = dma.done.wait (%p1332_p9), %s1050_s12, 128  }
 0x7c5   : > { %1637 = vsyncadd (%p1332_p9), %s1050_s12, 4294967168  ;;  %s28_s19 = sadd.s32 1, %s1680_s19   ;;  %s2177_s30 = sld [smem:[#allocation12_spill]] }
 0x7c6   : > { %p25_p12 = scmp.ge.s32.totalorder %s28_s19, 6   ;;  %s2178_s10 = sld [smem:[#allocation13_spill]] }
 0x7c7   : > { %s2179_s11 = sld [smem:[#allocation21_spill]] }
 0x7c8   : > { %s2180_s12 = sld [smem:[#allocation15_spill]] }
 0x7c9   : > { %s2181_s13 = sld [smem:[#allocation16_spill]] }
 0x7ca   : > { %s2182_s14 = sld [smem:[#allocation25_spill]]  ;;  %27 = sbr.rel (!%p25_p12) target bundleno = 22 (0x16), region = 147 }
 0x7cb   : > { %s2183_s15 = sld [smem:[#allocation18_spill]] }
 0x7cc   : > { %s2184_s16 = sld [smem:[#allocation19_spill]] }
 0x7cd   : > { %s2185_s17 = sld [smem:[#allocation20_spill]] }
 0x7ce   : > { %s2186_s18 = sld [smem:[#allocation22_spill]] }
 0x7cf   :  { %1056 = vsyncpa [#allocation3], 1 }
 0x7d0   :  { %1058 = vsyncpa [#allocation3 + $0x1], 1 }
 0x7d1   :  { %1059 = vsyncpa [#allocation6], 1 }
 0x7d2   :  { %1061 = vsyncpa [#allocation6 + $0x1], 1 }
 0x7d3   :  { %1062 = vsyncpa [#allocation4], 1 }
 0x7d4   :  { %1064 = vsyncpa [#allocation4 + $0x1], 1 }

</bundles_post_ra>
